<compile_context>
chip_gen: v7x
topology: tpu7x:2x2x1
jax: 0.10.0
libtpu: 0.0.40
codegen_flags: <defaults>
</compile_context>

<pallas_src>
import functools

import jax
import jax.numpy as jnp
from jax.experimental import pallas as pl
from jax.experimental.pallas import tpu as pltpu


def ode_euler_kernel(adj_s_ref, m_ref, xfull_ref, *rest, batch, rows, n_nodes,
                     has_x0):
    """o[b, r, :] = adj_s[r, :] @ x[b] + x[b, r, :] @ M  (+ dt * x0[b, r, :])."""
    if has_x0:
        x0_ref, o_ref = rest
    else:
        (o_ref,) = rest

    adj_s = adj_s_ref[...]        # (R, N)  rows pre-scaled by dt/2 * sigmoid(alpha)
    m = m_ref[...]                # (TF, TF) fused feature/temporal/residual(/x0)
    x_all = xfull_ref[...]        # (B, N, TF) full node axis (adjacency contraction)

    # Rows of x belonging to this node block (all batches merged into matmul rows).
    if rows == n_nodes:
        x_rows = x_all
    else:
        row0 = pl.multiple_of(pl.program_id(0) * rows, 8)
        x_rows = xfull_ref[:, pl.ds(row0, rows), :]

    tf = x_rows.shape[-1]
    # Single dominant matmul: (B*R, TF) @ (TF, TF).  Reshape is layout-free
    # (rows % 8 == 0, TF % 128 == 0).
    xm = jnp.dot(x_rows.reshape(batch * rows, tf), m,
                 preferred_element_type=jnp.float32).reshape(batch, rows, tf)

    for b in range(batch):        # B is small; the adj dots are fill/drain-bound
        acc = jnp.dot(adj_s, x_all[b], preferred_element_type=jnp.float32) + xm[b]
        if has_x0:
            acc = acc + x0_ref[b]
        o_ref[b] = acc.astype(o_ref.dtype)


def odeblock_forward(x, x0, alpha, adj, w, d, w2, d2, t=(0.0, 1.0)):
    """Pallas implementation of ODEblock.forward (euler, t=[0,1])."""
    B, N, T, Fd = x.shape
    TF = T * Fd
    dt = float(t[1] - t[0])
    f32 = jnp.float32

    # When x0 aliases x (ODEG's block.set_x0(x) pattern) fold "+ dt*x0" into M.
    fold_x0 = x0 is x
    id_coef = 1.0 - (2.0 if fold_x0 else 3.0) * dt

    # --- hoisted parameter-only math (plain JAX, runs once) ---
    w_eff = (w * jnp.clip(d, 0.0, 1.0)) @ w.T                     # (F, F)
    w2_eff = (w2 * jnp.clip(d2, 0.0, 1.0)) @ w2.T                 # (T, T)
    # x_flat @ M == x + dt * (-3*x + x@W + W2 @_t x) [+ dt*x when x0 folded]
    m_big = (id_coef * jnp.eye(TF, dtype=f32)
             + dt * (jnp.kron(jnp.eye(T, dtype=f32), w_eff.astype(f32))
                     + jnp.kron(w2_eff.astype(f32), jnp.eye(Fd, dtype=f32))))
    # Fold dt/2 * sigmoid(alpha) directly into the adjacency rows.
    aprime = (0.5 * dt) * jax.nn.sigmoid(alpha).astype(f32)        # (N, 1)
    adj_s = aprime * adj.astype(f32)                               # (N, N)

    x_flat = x.reshape(B, N, TF)

    # Node split only when each block carries enough matmul rows to amortize
    # per-step overhead / MXU fill (benefits only the 2-TC v7x; at small shapes
    # nb=1 on every generation so single-TC v5e/v6e never pay an extra step).
    nb = 2 if (N % 16 == 0 and B * (N // 2) >= 128) else 1
    R = N // nb

    operands = [adj_s, m_big, x_flat]
    in_specs = [
        pl.BlockSpec((R, N), lambda i: (i, 0)),          # scaled adjacency rows
        pl.BlockSpec((TF, TF), lambda i: (0, 0)),        # M (VMEM resident)
        pl.BlockSpec((B, N, TF), lambda i: (0, 0, 0)),   # x, all nodes (resident)
    ]
    bytes_accessed = 4 * (2 * B * N * TF + N * N + TF * TF)
    if not fold_x0:
        operands.append((dt * x0.astype(f32)).reshape(B, N, TF))
        in_specs.append(pl.BlockSpec((B, R, TF), lambda i: (0, i, 0)))
        bytes_accessed += 4 * B * N * TF

    z_flat = pl.pallas_call(
        functools.partial(ode_euler_kernel, batch=B, rows=R, n_nodes=N,
                          has_x0=not fold_x0),
        out_shape=jax.ShapeDtypeStruct((B, N, TF), x.dtype),
        grid_spec=pltpu.PrefetchScalarGridSpec(
            num_scalar_prefetch=0,
            grid=(nb,),
            in_specs=in_specs,
            out_specs=pl.BlockSpec((B, R, TF), lambda i: (0, i, 0)),
        ),
        compiler_params=pltpu.CompilerParams(
            dimension_semantics=("parallel",)),
        cost_estimate=pl.CostEstimate(
            flops=2 * B * N * TF * (N + TF),
            transcendentals=0,
            bytes_accessed=bytes_accessed),
    )(*operands)

    # odeint returns (len(t), *x.shape); [1:] keeps the single post-step state.
    return z_flat.reshape(B, N, T, Fd)[None]   # (1, B, N, T, F)


def odeblock_ref(x, x0, alpha, adj, w, d, w2, d2, t=(0.0, 1.0)):
    """Plain-JAX reference mirroring the torch code, for verification."""
    dt = float(t[1] - t[0])
    al = jax.nn.sigmoid(alpha)[None, :, :, None]                 # (1,N,1,1)
    w_eff = (w * jnp.clip(d, 0.0, 1.0)) @ w.T
    w2_eff = (w2 * jnp.clip(d2, 0.0, 1.0)) @ w2.T
    xa = jnp.einsum('ij,bjtf->bitf', adj, x)
    xw = jnp.einsum('bntf,fm->bntm', x, w_eff)
    xw2 = jnp.einsum('bntf,tm->bnmf', x, w2_eff)
    f = al / 2.0 * xa - x + xw - x + xw2 - x + x0
    return (x + dt * f)[None]


if __name__ == "__main__":
    B, N, T, Fd = 2, 16, 8, 32
    key = jax.random.PRNGKey(0)
    k_x, k_adj, k_w, k_d, k_w2, k_d2 = jax.random.split(key, 6)

    x = jax.random.normal(k_x, (B, N, T, Fd), jnp.float32)
    x0 = x  # ODEblock.set_x0(x) as used by ODEG (aliases x -> folded into M)

    # Row-normalized adjacency (deterministic synthetic graph).
    adj_raw = jax.random.uniform(k_adj, (N, N), jnp.float32)
    adj = adj_raw / jnp.sum(adj_raw, axis=1, keepdims=True)

    # ODEFunc parameters: same shapes as __init__ (alpha=0.8*ones, w=eye+eps,
    # d~[0,1.5] so the clamp is exercised), deterministic from PRNGKey(0).
    alpha = 0.8 * jnp.ones((N, 1), jnp.float32)
    w = jnp.eye(Fd, dtype=jnp.float32) + 0.02 * jax.random.normal(k_w, (Fd, Fd), jnp.float32)
    d = jax.random.uniform(k_d, (1, Fd), jnp.float32, 0.0, 1.5)
    w2 = jnp.eye(T, dtype=jnp.float32) + 0.02 * jax.random.normal(k_w2, (T, T), jnp.float32)
    d2 = jax.random.uniform(k_d2, (1, T), jnp.float32, 0.0, 1.5)

    z = odeblock_forward(x, x0, alpha, adj, w, d, w2, d2)
    z = jax.block_until_ready(z)

    z_ref = odeblock_ref(x, x0, alpha, adj, w, d, w2, d2)
    assert z.shape == (1, B, N, T, Fd), z.shape
    assert jnp.allclose(z, z_ref, atol=2e-4, rtol=2e-4), "mismatch vs reference"

    print("KERNEL_OK")
</pallas_src>

<mosaic_0001>
module attributes {stable_mosaic.version = 11 : i64} {
  func.func @ode_euler_kernel(%arg0: i32, %arg1: memref<16x16xf32, #tpu.memory_space<vmem>>, %arg2: memref<256x256xf32, #tpu.memory_space<vmem>>, %arg3: memref<2x16x256xf32, #tpu.memory_space<vmem>>, %arg4: memref<2x16x256xf32, #tpu.memory_space<vmem>>) attributes {dimension_semantics = [#tpu.dimension_semantics<parallel>], iteration_bounds = array<i64: 1>, scalar_prefetch = 0 : i64, scratch_operands = 0 : i64, tpu.core_type = #tpu.core_type<tc>, window_params = [{transform_indices = @transform_0, window_bounds = array<i64: 16, 16>}, {pipeline_mode = #tpu.pipeline_mode<synchronous>, transform_indices = @transform_1, window_bounds = array<i64: 256, 256>}, {pipeline_mode = #tpu.pipeline_mode<synchronous>, transform_indices = @transform_2, window_bounds = array<i64: 2, 16, 256>}, {transform_indices = @transform_3, window_bounds = array<i64: 2, 16, 256>}]} {
    %c0 = arith.constant 0 : index
    %c0_0 = arith.constant 0 : index
    %0 = vector.load %arg1[%c0, %c0_0] : memref<16x16xf32, #tpu.memory_space<vmem>>, vector<16x16xf32>
    %c0_1 = arith.constant 0 : index
    %c0_2 = arith.constant 0 : index
    %1 = vector.load %arg2[%c0_1, %c0_2] : memref<256x256xf32, #tpu.memory_space<vmem>>, vector<256x256xf32>
    %c0_3 = arith.constant 0 : index
    %c0_4 = arith.constant 0 : index
    %c0_5 = arith.constant 0 : index
    %2 = vector.load %arg3[%c0_3, %c0_4, %c0_5] : memref<2x16x256xf32, #tpu.memory_space<vmem>>, vector<2x16x256xf32>
    %3 = vector.shape_cast %2 : vector<2x16x256xf32> to vector<32x256xf32>
    %cst = arith.constant dense<0.000000e+00> : vector<32x256xf32>
    %4 = tpu.matmul %3, %1, %cst {dimension_numbers = #tpu.dot_dimension_numbers<[1], [0], [0], [1], [0, 0, 1, 1], [], []>} : vector<32x256xf32>, vector<256x256xf32>, vector<32x256xf32> -> vector<32x256xf32>
    %5 = vector.shape_cast %4 : vector<32x256xf32> to vector<2x16x256xf32>
    %6 = vector.extract_strided_slice %2 {offsets = [0, 0, 0], sizes = [1, 16, 256], strides = [1, 1, 1]} : vector<2x16x256xf32> to vector<1x16x256xf32>
    %7 = vector.shape_cast %6 : vector<1x16x256xf32> to vector<16x256xf32>
    %cst_6 = arith.constant dense<0.000000e+00> : vector<16x256xf32>
    %8 = tpu.matmul %0, %7, %cst_6 {dimension_numbers = #tpu.dot_dimension_numbers<[1], [0], [0], [1], [0, 0, 1, 1], [], []>} : vector<16x16xf32>, vector<16x256xf32>, vector<16x256xf32> -> vector<16x256xf32>
    %9 = vector.extract_strided_slice %5 {offsets = [0, 0, 0], sizes = [1, 16, 256], strides = [1, 1, 1]} : vector<2x16x256xf32> to vector<1x16x256xf32>
    %10 = vector.shape_cast %9 : vector<1x16x256xf32> to vector<16x256xf32>
    %11 = arith.addf %8, %10 : vector<16x256xf32>
    %c0_7 = arith.constant 0 : index
    %c0_8 = arith.constant 0 : index
    %c0_9 = arith.constant 0 : index
    %12 = vector.load %arg4[%c0_7, %c0_8, %c0_9] : memref<2x16x256xf32, #tpu.memory_space<vmem>>, vector<1x16x256xf32>
    %13 = vector.shape_cast %12 : vector<1x16x256xf32> to vector<16x256xf32>
    %14 = vector.shape_cast %11 : vector<16x256xf32> to vector<1x16x256xf32>
    tpu.vector_store %arg4[%c0_7, %c0_8, %c0_9], %14 {strides = array<i32>} : memref<2x16x256xf32, #tpu.memory_space<vmem>>, vector<1x16x256xf32>,
    %15 = vector.extract_strided_slice %2 {offsets = [1, 0, 0], sizes = [1, 16, 256], strides = [1, 1, 1]} : vector<2x16x256xf32> to vector<1x16x256xf32>
    %16 = vector.shape_cast %15 : vector<1x16x256xf32> to vector<16x256xf32>
    %cst_10 = arith.constant dense<0.000000e+00> : vector<16x256xf32>
    %17 = tpu.matmul %0, %16, %cst_10 {dimension_numbers = #tpu.dot_dimension_numbers<[1], [0], [0], [1], [0, 0, 1, 1], [], []>} : vector<16x16xf32>, vector<16x256xf32>, vector<16x256xf32> -> vector<16x256xf32>
    %18 = vector.extract_strided_slice %5 {offsets = [1, 0, 0], sizes = [1, 16, 256], strides = [1, 1, 1]} : vector<2x16x256xf32> to vector<1x16x256xf32>
    %19 = vector.shape_cast %18 : vector<1x16x256xf32> to vector<16x256xf32>
    %20 = arith.addf %17, %19 : vector<16x256xf32>
    %c1 = arith.constant 1 : index
    %c0_11 = arith.constant 0 : index
    %c0_12 = arith.constant 0 : index
    %21 = vector.load %arg4[%c1, %c0_11, %c0_12] : memref<2x16x256xf32, #tpu.memory_space<vmem>>, vector<1x16x256xf32>
    %22 = vector.shape_cast %21 : vector<1x16x256xf32> to vector<16x256xf32>
    %23 = vector.shape_cast %20 : vector<16x256xf32> to vector<1x16x256xf32>
    tpu.vector_store %arg4[%c1, %c0_11, %c0_12], %23 {strides = array<i32>} : memref<2x16x256xf32, #tpu.memory_space<vmem>>, vector<1x16x256xf32>,
    return
  }
  func.func @transform_0(%arg0: i32) -> (i32, i32) {
    %c0_i32 = arith.constant 0 : i32
    %c0_i32_0 = arith.constant 0 : i32
    return %arg0, %c0_i32 : i32, i32
  }
  func.func @transform_1(%arg0: i32) -> (i32, i32) {
    %c0_i32 = arith.constant 0 : i32
    %c0_i32_0 = arith.constant 0 : i32
    %c0_i32_1 = arith.constant 0 : i32
    return %c0_i32, %c0_i32_0 : i32, i32
  }
  func.func @transform_2(%arg0: i32) -> (i32, i32, i32) {
    %c0_i32 = arith.constant 0 : i32
    %c0_i32_0 = arith.constant 0 : i32
    %c0_i32_1 = arith.constant 0 : i32
    %c0_i32_2 = arith.constant 0 : i32
    return %c0_i32, %c0_i32_0, %c0_i32_1 : i32, i32, i32
  }
  func.func @transform_3(%arg0: i32) -> (i32, i32, i32) {
    %c0_i32 = arith.constant 0 : i32
    %c0_i32_0 = arith.constant 0 : i32
    %c0_i32_1 = arith.constant 0 : i32
    return %c0_i32, %arg0, %c0_i32_0 : i32, i32, i32
  }
}

</mosaic_0001>

<bundles_post_ra>
// kernel: tpu_custom_call.1
= control target key start
LH: loop header
LB: loop body
LE: loop exit
PB: predicated region body
PF: predicated region fallthrough
CT: control target
= control target key end

     0   :  { %8 = vsyncpa [#allocation3], 0  ;;  %s716_s0 = inlined_call_operand.hbm [shape: f32[16,16], index: 0, kind: input, shape index: {}]   ;;  %s717_s1 = inlined_call_operand.hbm [shape: f32[256,256], index: 1, kind: input, shape index: {}]   ;;  %s718_s2 = inlined_call_operand.hbm [shape: f32[2,16,256], index: 2, kind: input, shape index: {}]   ;;  %s719_s3 = inlined_call_operand.hbm [shape: f32[2,16,256], index: 3, kind: output, shape index: {}]  }
   0x1   :  { %9 = vsyncpa [#allocation6], 0 }
   0x2   :  { %10 = vsyncpa [#allocation4], 0  ;;  %s594_s12 = smov [#allocation5]   ;;  %s500_s16 = scalar_lea.hbm %s717_s1, 8192 }
   0x3   :  { %s28_s13 = sshll.u32 %s594_s12, 4  ;;  %p501_p0 = scmp.ne.s32.totalorder %s717_s1, %s500_s16  ;;  %s29_s13 = int_to_ptr.vmem [resolvable:$true] %s28_s13 }
   0x4   :  { %p504_p1 = scmp.lt.u32.totalorder %s500_s16, %s717_s1 }
   0x6   :  { %p506_p2 = pnand %p504_p1, %p501_p0 }
   0x8   :  { %509 = shalt.err (!%p506_p2)
}
   0x9   :  { %s510_s21 = scalar_lea.vmem %s29_s13, 8192  ;;  %p515_p4 = scmp.lt.s32.totalorder %s29_s13, %s29_s13 }
   0xa   :  { %p511_p3 = scmp.ne.s32.totalorder %s29_s13, %s510_s21  ;;  %p516_p5 = scmp.lt.s32.totalorder %s510_s21, %s510_s21 }
   0xc   :  { %p517_p6 = por %p516_p5, %p515_p4 }
   0xe   :  { %p518_p7 = pnand %p517_p6, %p511_p3 }
  0x10   :  { %521 = shalt.err (!%p518_p7)
}
  0x11   :  { %s595_s22 = smov 256   ;;  %s596_s23 = smov 16  }
  0x12   :  { %34 = dma.hbm_to_vmem [thread:$0]  %s717_s1, 8192, %s29_s13, [#allocation6], %s595_s22, %s595_s22, %s596_s23  }
  0x13   :  { %s597_s26 = smov [#allocation2]   ;;  %s522_s30 = scalar_lea.hbm %s716_s0, 256 }
  0x14   :  { %s16_s27 = sshll.u32 %s597_s26, 4  ;;  %p523_p8 = scmp.ne.s32.totalorder %s716_s0, %s522_s30  ;;  %s17_s27 = int_to_ptr.vmem [resolvable:$true] %s16_s27 }
  0x15   :  { %p526_p9 = scmp.lt.u32.totalorder %s522_s30, %s716_s0 }
  0x17   :  { %p528_p10 = pnand %p526_p9, %p523_p8 }
  0x19   :  { %531 = shalt.err (!%p528_p10)
}
  0x1a   :  { %s532_s8 = scalar_lea.vmem %s17_s27, 256  ;;  %p537_p12 = scmp.lt.s32.totalorder %s17_s27, %s17_s27 }
  0x1b   :  { %p533_p11 = scmp.ne.s32.totalorder %s17_s27, %s532_s8  ;;  %p538_p13 = scmp.lt.s32.totalorder %s532_s8, %s532_s8 }
  0x1d   :  { %p539_p0 = por %p538_p13, %p537_p12 }
  0x1f   :  { %p540_p1 = pnand %p539_p0, %p533_p11 }
  0x21   :  { %543 = shalt.err (!%p540_p1)
}
  0x22   :  { %s598_s1 = smov 128   ;;  %s599_s9 = smov 8  }
  0x23   :  { %22 = dma.hbm_to_vmem [thread:$0]  %s716_s0, 256, %s17_s27, [#allocation3], %s598_s1, %s598_s1, %s599_s9  }
  0x24   :  { %s600_s12 = smov [#allocation7]   ;;  %s544_s16 = scalar_lea.hbm %s718_s2, 1024 }
  0x25   :  { %s40_s13 = sshll.u32 %s600_s12, 4  ;;  %p545_p2 = scmp.ne.s32.totalorder %s718_s2, %s544_s16  ;;  %s41_s13 = int_to_ptr.vmem [resolvable:$true] %s40_s13 }
  0x26   :  { %p548_p3 = scmp.lt.u32.totalorder %s544_s16, %s718_s2 }
  0x28   :  { %p550_p4 = pnand %p548_p3, %p545_p2 }
  0x2a   :  { %553 = shalt.err (!%p550_p4)
}
  0x2b   :  { %s554_s21 = scalar_lea.vmem %s41_s13, 1024  ;;  %p559_p6 = scmp.lt.s32.totalorder %s41_s13, %s41_s13 }
  0x2c   :  { %p555_p5 = scmp.ne.s32.totalorder %s41_s13, %s554_s21  ;;  %p560_p7 = scmp.lt.s32.totalorder %s554_s21, %s554_s21 }
  0x2e   :  { %p561_p8 = por %p560_p7, %p559_p6 }
  0x30   :  { %p562_p9 = pnand %p561_p8, %p555_p5 }
  0x32   :  { %565 = shalt.err (!%p562_p9)
}
  0x33   :  { %46 = dma.hbm_to_vmem [thread:$0]  %s718_s2, 1024, %s41_s13, [#allocation6], %s595_s22, %s595_s22, %s596_s23  }
  0x34   :  { %588 = dma.done.wait [#allocation3], 256  }
  0x35   :  { %589 = vsyncadd [#allocation3], 4294967040 }
  0x36   :  { %590 = dma.done.wait [#allocation6], 9216  }
  0x37   :  { %591 = vsyncadd [#allocation6], 4294958080  ;;  %v601_v0 = vmov 0.0   ;;  %v59_v1 = vld [vmem:[#allocation5 + $0x8] sm:$0xff]  ;;  %v61_v2 = vld [vmem:[#allocation5 + $0x18] sm:$0xff]  ;;  %vm219_vm0 = vcmask 130048  }
  0x38   :  { %290 = vmatprep.mubr.f32.mxu0 %v601_v0  ;;  %v58_v3 = vld [vmem:[#allocation5] sm:$0xff]  ;;  %v411_v4 = vpack.c.bf16 %v61_v2, %v59_v1  ;;  %v60_v5 = vld [vmem:[#allocation5 + $0x10] sm:$0xff]  ;;  %v63_v6 = vld [vmem:[#allocation5 + $0x28] sm:$0xff]  ;;  %s602_s2 = smov [#allocation8]  }
  0x39   :  { %v65_v7 = vld [vmem:[#allocation5 + $0x38] sm:$0xff]  ;;  %v413_v8 = vpack.c.bf16 %v60_v5, %v58_v3  ;;  %v62_v10 = vld [vmem:[#allocation5 + $0x20] sm:$0xff]  ;;  %v64_v11 = vld [vmem:[#allocation5 + $0x30] sm:$0xff]  ;;  %s394_s25 = sshll.u32 %s602_s2, 4  ;;  %s395_s25 = int_to_ptr.vmem [resolvable:$true] %s394_s25 }
  0x3a   :  { %v415_v9 = vpack.c.bf16 %v65_v7, %v63_v6  ;;  %v67_v12 = vld [vmem:[#allocation5 + $0x48] sm:$0xff]  ;;  %412 = vmatprep.subr.bf16.mxu1 %v411_v4  ;;  %v69_v13 = vld [vmem:[#allocation5 + $0x58] sm:$0xff]  ;;  %v417_v14 = vpack.c.bf16 %v64_v11, %v62_v10  ;;  %v66_v16 = vld [vmem:[#allocation5 + $0x40] sm:$0xff]  ;;  %s566_s26 = scalar_lea.vmem %s395_s25, 1024  ;;  %p571_p11 = scmp.lt.s32.totalorder %s395_s25, %s395_s25 }
  0x3b   :  { %414 = vmatpush1.bf16.msra.mxu1 %v413_v8  ;;  %v419_v15 = vpack.c.bf16 %v69_v13, %v67_v12  ;;  %v68_v17 = vld [vmem:[#allocation5 + $0x50] sm:$0xff]  ;;  %v71_v18 = vld [vmem:[#allocation5 + $0x68] sm:$0xff]  ;;  %v73_v19 = vld [vmem:[#allocation5 + $0x78] sm:$0xff]  ;;  %p567_p10 = scmp.ne.s32.totalorder %s395_s25, %s566_s26  ;;  %p572_p12 = scmp.lt.s32.totalorder %s566_s26, %s566_s26 }
  0x3c   :  { %416 = vmatprep.subr.bf16.mxu1 %v415_v9  ;;  %v421_v20 = vpack.c.bf16 %v68_v17, %v66_v16  ;;  %v423_v21 = vpack.c.bf16 %v73_v19, %v71_v18  ;;  %v70_v22 = vld [vmem:[#allocation5 + $0x60] sm:$0xff]  ;;  %v72_v23 = vld [vmem:[#allocation5 + $0x70] sm:$0xff]  ;;  %v75_v24 = vld [vmem:[#allocation5 + $0x88] sm:$0xff] }
  0x3d   :  { %v77_v25 = vld [vmem:[#allocation5 + $0x98] sm:$0xff]  ;;  %v425_v26 = vpack.c.bf16 %v72_v23, %v70_v22  ;;  %v74_v28 = vld [vmem:[#allocation5 + $0x80] sm:$0xff]  ;;  %v76_v29 = vld [vmem:[#allocation5 + $0x90] sm:$0xff]  ;;  %p573_p13 = por %p572_p12, %p571_p11 }
  0x3e   :  { %v427_v27 = vpack.c.bf16 %v77_v25, %v75_v24  ;;  %v79_v30 = vld [vmem:[#allocation5 + $0xa8] sm:$0xff]  ;;  %v81_v31 = vld [vmem:[#allocation5 + $0xb8] sm:$0xff]  ;;  %v429_v32 = vpack.c.bf16 %v76_v29, %v74_v28  ;;  %v78_v34 = vld [vmem:[#allocation5 + $0xa0] sm:$0xff] }
  0x3f   :  { %418 = vmatpush1.bf16.msra.mxu1 %v417_v14  ;;  %v431_v33 = vpack.c.bf16 %v81_v31, %v79_v30  ;;  %v80_v35 = vld [vmem:[#allocation5 + $0xb0] sm:$0xff]  ;;  %v83_v36 = vld [vmem:[#allocation5 + $0xc8] sm:$0xff]  ;;  %v85_v37 = vld [vmem:[#allocation5 + $0xd8] sm:$0xff]  ;;  %p574_p0 = pnand %p573_p13, %p567_p10 }
  0x40   :  { %420 = vmatprep.subr.bf16.mxu1 %v419_v15  ;;  %v433_v38 = vpack.c.bf16 %v80_v35, %v78_v34  ;;  %v82_v39 = vld [vmem:[#allocation5 + $0xc0] sm:$0xff]  ;;  %v123_v40 = vld [vmem:[#allocation7 + $0x8] sm:$0xff]  ;;  %v666_v41 = vld [vmem:[#allocation7 + $0x18] sm:$0xff]  ;;  %v435_v42 = vpack.c.bf16 %v85_v37, %v83_v36 }
  0x41   :  { %v84_v43 = vld [vmem:[#allocation5 + $0xd0] sm:$0xff]  ;;  %v475_v44 = vpack.c.bf16 %v666_v41, %v123_v40  ;;  %v669_v45 = vld [vmem:[#allocation7] sm:$0xff]  ;;  %194 = vmatprep.mubr.f32.mxu1 %v123_v40  ;;  %v87_v47 = vld [vmem:[#allocation5 + $0xe8] sm:$0xff] }
  0x42   :  { %v671_v46 = vld [vmem:[#allocation7 + $0x10] sm:$0xff]  ;;  %v89_v48 = vld [vmem:[#allocation5 + $0xf8] sm:$0xff]  ;;  %v675_v50 = vld [vmem:[#allocation7 + $0x28] sm:$0xff]  ;;  %v437_v53 = vpack.c.bf16 %v84_v43, %v82_v39 }
  0x43   :  { %422 = vmatpush1.bf16.msra.mxu1 %v421_v20  ;;  %v477_v49 = vpack.c.bf16 %v671_v46, %v669_v45  ;;  %476 = vmatprep.subr.bf16.mxu0 %v475_v44  ;;  %v677_v51 = vld [vmem:[#allocation7 + $0x38] sm:$0xff]  ;;  %v679_v52 = vld [vmem:[#allocation7 + $0x20] sm:$0xff]  ;;  %v56_v54 = vld [vmem:[#allocation2] sm:$0xff]  ;;  %v439_v57 = vpack.c.bf16 %v89_v48, %v87_v47 }
  0x44   :  { %424 = vmatprep.subr.bf16.mxu1 %v423_v21  ;;  %v479_v55 = vpack.c.bf16 %v677_v51, %v675_v50  ;;  %v683_v56 = vld [vmem:[#allocation7 + $0x30] sm:$0xff]  ;;  %v86_v58 = vld [vmem:[#allocation5 + $0xe0] sm:$0xff]  ;;  %v91_v61 = vld [vmem:[#allocation5 + $0x108] sm:$0xff] }
  0x45   :  { %478 = vmatpush1.bf16.msra.mxu0 %v477_v49  ;;  %v88_v59 = vld [vmem:[#allocation5 + $0xf0] sm:$0xff]  ;;  %v481_v60 = vpack.c.bf16 %v683_v56, %v679_v52  ;;  %v93_v62 = vld [vmem:[#allocation5 + $0x118] sm:$0xff]  ;;  %v90_v3 = vld [vmem:[#allocation5 + $0x100] sm:$0xff] }
  0x46   :  { %480 = vmatprep.subr.bf16.mxu0 %v479_v55  ;;  %v441_v63 = vpack.c.bf16 %v88_v59, %v86_v58  ;;  %v57_v1 = vld [vmem:[#allocation2 + $0x8] sm:$0xff]  ;;  %v443_v2 = vpack.c.bf16 %v93_v62, %v91_v61  ;;  %v92_v4 = vld [vmem:[#allocation5 + $0x110] sm:$0xff]  ;;  %v95_v5 = vld [vmem:[#allocation5 + $0x128] sm:$0xff] }
  0x47   :  { %426 = vmatpush1.bf16.msra.mxu1 %v425_v26  ;;  %v97_v6 = vld [vmem:[#allocation5 + $0x138] sm:$0xff]  ;;  %v445_v7 = vpack.c.bf16 %v92_v4, %v90_v3  ;;  %v94_v9 = vld [vmem:[#allocation5 + $0x120] sm:$0xff]  ;;  %v96_v10 = vld [vmem:[#allocation5 + $0x130] sm:$0xff] }
  0x48   :  { %428 = vmatprep.subr.bf16.mxu1 %v427_v27  ;;  %407 = vmatmul.mubr.msk.f32.vlgmr.msra.gmra.mrb[0].mxu0 %vm219_vm0, %v56_v54  ;;  %v447_v8 = vpack.c.bf16 %v97_v6, %v95_v5  ;;  %v99_v11 = vld [vmem:[#allocation5 + $0x148] sm:$0xff]  ;;  %v101_v12 = vld [vmem:[#allocation5 + $0x158] sm:$0xff]  ;;  %v449_v13 = vpack.c.bf16 %v96_v10, %v94_v9  ;;  %v98_v15 = vld [vmem:[#allocation5 + $0x140] sm:$0xff] }
  0x49   :  { %482 = vmatpush1.bf16.msra.mxu0 %v481_v60  ;;  %296 = vmatprep.mubr.f32.mxu0 %v601_v0  ;;  %v451_v14 = vpack.c.bf16 %v101_v12, %v99_v11  ;;  %v100_v16 = vld [vmem:[#allocation5 + $0x150] sm:$0xff]  ;;  %v103_v17 = vld [vmem:[#allocation5 + $0x168] sm:$0xff]  ;;  %v105_v18 = vld [vmem:[#allocation5 + $0x178] sm:$0xff] }
  0x4a   :  { %v453_v19 = vpack.c.bf16 %v100_v16, %v98_v15  ;;  %v455_v20 = vpack.c.bf16 %v105_v18, %v103_v17  ;;  %v102_v21 = vld [vmem:[#allocation5 + $0x160] sm:$0xff]  ;;  %v104_v22 = vld [vmem:[#allocation5 + $0x170] sm:$0xff]  ;;  %v107_v23 = vld [vmem:[#allocation5 + $0x188] sm:$0xff] }
  0x4b   :  { %430 = vmatpush1.bf16.msra.mxu1 %v429_v32  ;;  %v109_v24 = vld [vmem:[#allocation5 + $0x198] sm:$0xff]  ;;  %v457_v25 = vpack.c.bf16 %v104_v22, %v102_v21  ;;  %v106_v26 = vld [vmem:[#allocation5 + $0x180] sm:$0xff]  ;;  %v108_v27 = vld [vmem:[#allocation5 + $0x190] sm:$0xff] }
  0x4c   :  { %432 = vmatprep.subr.bf16.mxu1 %v431_v33  ;;  %408 = vmatmul.mubr.msk.f32.gmra.mrb[2].mxu0 %vm219_vm0, %v57_v1  ;;  %v111_v28 = vld [vmem:[#allocation5 + $0x1a8] sm:$0xff]  ;;  %v113_v29 = vld [vmem:[#allocation5 + $0x1b8] sm:$0xff]  ;;  %v461_v30 = vpack.c.bf16 %v108_v27, %v106_v26  ;;  %v110_v32 = vld [vmem:[#allocation5 + $0x1a0] sm:$0xff] }
  0x4d   :  { %371 = vmatprep.mubr.f32.mxu0 %v601_v0  ;;  %v463_v31 = vpack.c.bf16 %v113_v29, %v111_v28  ;;  %v112_v33 = vld [vmem:[#allocation5 + $0x1b0] sm:$0xff]  ;;  %v115_v34 = vld [vmem:[#allocation5 + $0x1c8] sm:$0xff]  ;;  %v117_v35 = vld [vmem:[#allocation5 + $0x1d8] sm:$0xff] }
  0x4e   :  { %v465_v36 = vpack.c.bf16 %v112_v33, %v110_v32  ;;  %v467_v37 = vpack.c.bf16 %v117_v35, %v115_v34  ;;  %v116_v39 = vld [vmem:[#allocation5 + $0x1d0] sm:$0xff]  ;;  %v119_v40 = vld [vmem:[#allocation5 + $0x1e8] sm:$0xff]  ;;  %v118_v47 = vld [vmem:[#allocation5 + $0x1e0] sm:$0xff] }
  0x4f   :  { %434 = vmatpush1.bf16.msra.mxu1 %v433_v38  ;;  %v114_v38 = vld [vmem:[#allocation5 + $0x1c0] sm:$0xff]  ;;  %v120_v48 = vld [vmem:[#allocation5 + $0x1f0] sm:$0xff] }
  0x50   :  { %436 = vmatprep.subr.bf16.mxu1 %v435_v42  ;;  %409 = vmatmul.mubr.msk.f32.vlgmr.msra.gmra.mrb[4].mxu0 %vm219_vm0, %v56_v54  ;;  %v121_v42 = vld [vmem:[#allocation5 + $0x1f8] sm:$0xff]  ;;  %v469_v43 = vpack.c.bf16 %v116_v39, %v114_v38  ;;  %v473_v49 = vpack.c.bf16 %v120_v48, %v118_v47 }
  0x51   :  { %377 = vmatprep.mubr.f32.mxu0 %v601_v0  ;;  %v459_v0 = vpack.c.bf16 %v109_v24, %v107_v23  ;;  %v471_v44 = vpack.c.bf16 %v121_v42, %v119_v40 }
  0x53   :  { %438 = vmatpush1.bf16.msra.mxu1 %v437_v53 }
  0x54   :  { %440 = vmatprep.subr.bf16.mxu1 %v439_v57  ;;  %410 = vmatmul.mubr.msk.f32.gmra.mrb[6].mxu0 %vm219_vm0, %v57_v1 }
  0x57   :  { %442 = vmatpush1.bf16.msra.mxu1 %v441_v63 }
  0x58   :  { %444 = vmatprep.subr.bf16.mxu1 %v443_v2 }
  0x5b   :  { %446 = vmatpush1.bf16.msra.mxu1 %v445_v7 }
  0x5c   :  { %448 = vmatprep.subr.bf16.mxu1 %v447_v8 }
  0x5f   :  { %450 = vmatpush1.bf16.msra.mxu1 %v449_v13 }
  0x60   :  { %452 = vmatprep.subr.bf16.mxu1 %v451_v14 }
  0x63   :  { %454 = vmatpush1.bf16.msra.mxu1 %v453_v19 }
  0x64   :  { %456 = vmatprep.subr.bf16.mxu1 %v455_v20 }
  0x67   :  { %458 = vmatpush1.bf16.msra.mxu1 %v457_v25 }
  0x68   :  { %460 = vmatprep.subr.bf16.mxu1 %v459_v0 }
  0x6b   :  { %462 = vmatpush1.bf16.msra.mxu1 %v461_v30 }
  0x6c   :  { %464 = vmatprep.subr.bf16.mxu1 %v463_v31 }
  0x6f   :  { %466 = vmatpush1.bf16.msra.mxu1 %v465_v36 }
  0x70   :  { %468 = vmatprep.subr.bf16.mxu1 %v467_v37 }
  0x73   :  { %470 = vmatpush1.bf16.msra.mxu1 %v469_v43 }
  0x74   :  { %472 = vmatprep.subr.bf16.mxu1 %v471_v44 }
  0x77   :  { %474 = vmatpush1.bf16.msra.mxu1 %v473_v49 }
  0x7a   :  { %195 = vmatmul.mubr.f32.vlgmr.msra.gmra.mrb[0].mxu1 %v669_v45 }
  0x7b   :  { %200 = vmatprep.mubr.f32.mxu1 %v666_v41 }
  0x7e   :  { %201 = vmatmul.mubr.f32.gmra.mrb[2].mxu1 %v671_v46 }
  0x7f   :  { %206 = vmatprep.mubr.f32.mxu1 %v675_v50 }
  0x82   :  { %207 = vmatmul.mubr.f32.gmra.mrb[4].mxu1 %v679_v52 }
  0x83   :  { %212 = vmatprep.mubr.f32.mxu1 %v677_v51 }
  0x86   :  { %213 = vmatmul.mubr.f32.gmra.mrb[6].mxu1 %v683_v56 }
 0x11b   :  { %v292_v53 = vpop.f32.mrb[0].mxu0 }
 0x11c   :  { %v294_v54 = vpop.f32.mrb[1].mxu0 }
 0x11f   :  { %v298_v55 = vpop.f32.mrb[2].mxu0 }
 0x120   :  { %v300_v57 = vpop.f32.mrb[3].mxu0 }
 0x123   :  { %v373_v58 = vpop.f32.mrb[4].mxu0 }
 0x124   :  { %v375_v59 = vpop.f32.mrb[5].mxu0 }
 0x127   :  { %v379_v60 = vpop.f32.mrb[6].mxu0 }
 0x128   :  { %v381_v45 = vpop.f32.mrb[7].mxu0 }
 0x14d   :  { %v196_v61 = vpop.f32.mrb[0].mxu1 }
 0x14e   :  { %v293_v41 = vadd.f32 %v292_v53, %v196_v61  ;;  %v198_v62 = vpop.f32.mrb[1].mxu1 }
 0x14f   :  { %v295_v46 = vadd.f32 %v294_v54, %v198_v62 }
 0x150   :  { %303 = vst [vmem:[#allocation8] sm:$0xff] %v293_v41 }
 0x151   :  { %304 = vst [vmem:[#allocation8 + $0x8] sm:$0xff] %v295_v46  ;;  %v202_v50 = vpop.f32.mrb[2].mxu1 }
 0x152   :  { %v299_v52 = vadd.f32 %v298_v55, %v202_v50  ;;  %v204_v63 = vpop.f32.mrb[3].mxu1 }
 0x153   :  { %v301_v51 = vadd.f32 %v300_v57, %v204_v63 }
 0x154   :  { %305 = vst [vmem:[#allocation8 + $0x10] sm:$0xff] %v299_v52 }
 0x155   :  { %306 = vst [vmem:[#allocation8 + $0x18] sm:$0xff] %v301_v51  ;;  %v208_v56 = vpop.f32.mrb[4].mxu1 }
 0x156   :  { %v374_v1 = vadd.f32 %v373_v58, %v208_v56  ;;  %v210_v2 = vpop.f32.mrb[5].mxu1 }
 0x157   :  { %v376_v3 = vadd.f32 %v375_v59, %v210_v2 }
 0x158   :  { %385 = vst [vmem:[#allocation8 + $0x20] sm:$0xff] %v374_v1 }
 0x159   :  { %386 = vst [vmem:[#allocation8 + $0x28] sm:$0xff] %v376_v3  ;;  %v214_v4 = vpop.f32.mrb[6].mxu1 }
 0x15a   :  { %v380_v5 = vadd.f32 %v379_v60, %v214_v4  ;;  %v216_v6 = vpop.f32.mrb[7].mxu1 }
 0x15b   :  { %v382_v7 = vadd.f32 %v381_v45, %v216_v6 }
 0x15c   :  { %387 = vst [vmem:[#allocation8 + $0x30] sm:$0xff] %v380_v5 }
 0x15d   :  { %388 = vst [vmem:[#allocation8 + $0x38] sm:$0xff] %v382_v7 }
 0x15e   :  { %577 = shalt.err (!%p574_p0)
}
 0x15f   :  { %s578_s29 = scalar_lea.hbm %s719_s3, 1024 }
 0x160   :  { %p579_p1 = scmp.ne.s32.totalorder %s719_s3, %s578_s29  ;;  %p582_p2 = scmp.lt.u32.totalorder %s578_s29, %s719_s3 }
 0x162   :  { %p584_p3 = pnand %p582_p2, %p579_p1 }
 0x164   :  { %587 = shalt.err (!%p584_p3)
}
 0x165   :  { %400 = dma.vmem_to_hbm [thread:$0]  %s395_s25, 1024, %s719_s3, [#allocation4], %s595_s22, %s595_s22, %s596_s23  }
 0x166   :  { %592 = dma.done.wait [#allocation4], 1024  }
 0x167   :  { %593 = vsyncadd [#allocation4], 4294966272 }
 0x168   :  { %404 = vsyncpa [#allocation3], 1 }
 0x169   :  { %405 = vsyncpa [#allocation6], 1 }
 0x16a   :  { %406 = vsyncpa [#allocation4], 1 }

</bundles_post_ra>
